<compile_context>
chip_gen: v7x
topology: tpu7x:2x2x1
jax: 0.10.0
libtpu: 0.0.40
codegen_flags: <defaults>
</compile_context>

<pallas_src>
import functools

import jax
import jax.numpy as jnp
from jax.experimental import pallas as pl
from jax.experimental.pallas import tpu as pltpu

_LANE = 128     # lane width: last-dim padding target
_SUBLANE = 8    # sublane width: batch-tile multiple


def _round_up(x, m):
    return ((x + m - 1) // m) * m


def _mlp_fused_kernel(*refs, layer_cfg):
    """Whole-MLP kernel body (fully unrolled over layers).

    refs = (x_ref, w0, b0, w1, b1, ..., w_{n-1}, b_{n-1}, alphas_ref, o_ref)

    layer_cfg: tuple of (has_prelu: bool, add_residual: bool) per layer
               (static Python data -> the layer loop is unrolled at trace time).
    """
    n_layers = len(layer_cfg)
    x_ref = refs[0]
    wb_refs = refs[1:1 + 2 * n_layers]
    alphas_ref = refs[1 + 2 * n_layers]
    o_ref = refs[2 + 2 * n_layers]

    h = x_ref[...]                                   # (TILE_B, in_pad) f32
    for i, (has_prelu, add_res) in enumerate(layer_cfg):
        w = wb_refs[2 * i][...]                      # (in_pad_i, out_pad_i)
        b = wb_refs[2 * i + 1][...]                  # (1, out_pad_i) -> broadcast
        y = jnp.dot(h, w, preferred_element_type=jnp.float32) + b
        if has_prelu:
            a = alphas_ref[:, i:i + 1]               # (1, 1) shared PReLU alpha
            # prelu(y) = max(y,0) + a*min(y,0); keeps padded zero columns zero.
            y = jnp.maximum(y, 0.0) + a * jnp.minimum(y, 0.0)
        if add_res:
            # PyTorch: x = layer(x) + x  (residual AFTER PReLU), in == out dim.
            y = y + h
        h = y
    o_ref[...] = h.astype(o_ref.dtype)


class MLPPallas:
    """Mirror of the PyTorch MLP forward; parameters built deterministically."""

    def __init__(self, input_dim, output_dim=128, hidden_dim=(64, 64),
                 dropout=0.0, residual=False, key=None, max_tile_b=512):
        assert dropout == 0.0, "only eval-mode (p=0) dropout supported"
        self.residual = residual
        self.input_dim = input_dim
        self.output_dim = output_dim
        self.max_tile_b = max_tile_b
        if residual:
            assert len(set(hidden_dim)) == 1
        if key is None:
            key = jax.random.PRNGKey(0)

        dims = [input_dim] + list(hidden_dim) + [output_dim]
        pdims = [_round_up(d, _LANE) for d in dims]
        self.pdims = pdims
        n_layers = len(dims) - 1

        self.params = []          # unpadded (w, b, alpha, has_prelu) for reference
        self.padded_wb = []       # flat [w0_pad, b0_pad, w1_pad, b1_pad, ...]
        layer_cfg = []
        alphas = []
        for i in range(n_layers):
            key, kw, kb = jax.random.split(key, 3)
            fan_in, fan_out = dims[i], dims[i + 1]
            scale = 1.0 / jnp.sqrt(jnp.float32(fan_in))
            w = jax.random.uniform(kw, (fan_in, fan_out), jnp.float32,
                                   minval=-scale, maxval=scale)
            b = jax.random.uniform(kb, (fan_out,), jnp.float32,
                                   minval=-scale, maxval=scale)
            has_prelu = i < n_layers - 1               # last layer is plain Linear
            alpha = jnp.float32(0.25)                  # PReLU default init (shared)
            self.params.append((w, b, alpha, has_prelu))

            # Zero-padded copies (lane-dense layout, exact math).
            w_pad = jnp.zeros((pdims[i], pdims[i + 1]), jnp.float32)
            w_pad = w_pad.at[:fan_in, :fan_out].set(w)
            b_pad = jnp.zeros((1, pdims[i + 1]), jnp.float32)
            b_pad = b_pad.at[0, :fan_out].set(b)
            self.padded_wb += [w_pad, b_pad]

            add_res = residual and 0 < i < n_layers - 1
            layer_cfg.append((has_prelu, add_res))
            alphas.append(alpha)

        self.layer_cfg = tuple(layer_cfg)
        # Alphas live in one small lane-padded (1, 128) f32 array.
        self.alphas = jnp.zeros((1, _LANE), jnp.float32)
        self.alphas = self.alphas.at[0, :n_layers].set(jnp.asarray(alphas))

        # Static in_specs for the resident (constant index_map) parameters.
        self._wb_specs = [pl.BlockSpec(arr.shape, lambda i: (0, 0))
                          for arr in self.padded_wb]
        self._alpha_spec = pl.BlockSpec(self.alphas.shape, lambda i: (0, 0))
        self._kernel = functools.partial(_mlp_fused_kernel,
                                         layer_cfg=self.layer_cfg)

    def __call__(self, x):
        batch, feat = x.shape
        assert feat == self.input_dim
        in_pad, out_pad = self.pdims[0], self.pdims[-1]

        # Batch tiling: TILE_B is a multiple of 8, capped for VMEM headroom
        # (sized against v7x's smaller 64 MiB VMEM).
        tile_b = min(self.max_tile_b, _round_up(batch, _SUBLANE))
        batch_pad = _round_up(batch, tile_b)

        # Zero-pad activations to (batch_pad, in_pad); padded rows/cols are
        # sliced away below (rows are independent, so padding is exact).
        xp = jnp.pad(x.astype(jnp.float32),
                     ((0, batch_pad - batch), (0, in_pad - feat)))

        grid = (batch_pad // tile_b,)

        out = pl.pallas_call(
            self._kernel,
            out_shape=jax.ShapeDtypeStruct((batch_pad, out_pad), jnp.float32),
            grid=grid,
            in_specs=[pl.BlockSpec((tile_b, in_pad), lambda i: (i, 0))]
                     + self._wb_specs + [self._alpha_spec],
            out_specs=pl.BlockSpec((tile_b, out_pad), lambda i: (i, 0)),
            compiler_params=pltpu.CompilerParams(
                dimension_semantics=("parallel",)),
        )(xp, *self.padded_wb, self.alphas)

        return out[:batch, :self.output_dim]


def _reference(x, params, residual):
    """Pure-JAX reference (unpadded) for a correctness check."""
    n = len(params)
    h = x
    for i, (w, b, alpha, has_prelu) in enumerate(params):
        y = h @ w + b
        if has_prelu:
            y = jnp.where(y > 0, y, alpha * y)
        if residual and 0 < i < n - 1:
            y = y + h
        h = y
    return h


if __name__ == "__main__":
    key = jax.random.PRNGKey(0)
    kx, kp = jax.random.split(key)

    batch, input_dim, output_dim = 8, 32, 128
    hidden_dim = (64, 64)

    x = jax.random.normal(kx, (batch, input_dim), jnp.float32)

    mlp = MLPPallas(input_dim, output_dim=output_dim, hidden_dim=hidden_dim,
                    dropout=0.0, residual=True, key=kp)

    out = mlp(x)
    out = jax.block_until_ready(out)

    ref = _reference(x, mlp.params, mlp.residual)
    assert out.shape == (batch, output_dim)
    assert jnp.allclose(out, ref, atol=1e-4, rtol=1e-4), (
        float(jnp.max(jnp.abs(out - ref))))

    print("KERNEL_OK")
</pallas_src>

<mosaic_0001>
module attributes {stable_mosaic.version = 11 : i64} {
  func.func @_mlp_fused_kernel(%arg0: i32, %arg1: memref<8x128xf32, #tpu.memory_space<vmem>>, %arg2: memref<128x128xf32, #tpu.memory_space<vmem>>, %arg3: memref<1x128xf32, #tpu.memory_space<vmem>>, %arg4: memref<128x128xf32, #tpu.memory_space<vmem>>, %arg5: memref<1x128xf32, #tpu.memory_space<vmem>>, %arg6: memref<128x128xf32, #tpu.memory_space<vmem>>, %arg7: memref<1x128xf32, #tpu.memory_space<vmem>>, %arg8: memref<1x128xf32, #tpu.memory_space<vmem>>, %arg9: memref<8x128xf32, #tpu.memory_space<vmem>>) attributes {dimension_semantics = [#tpu.dimension_semantics<parallel>], iteration_bounds = array<i64: 1>, scalar_prefetch = 0 : i64, scratch_operands = 0 : i64, tpu.core_type = #tpu.core_type<tc>, window_params = [{transform_indices = @transform_0, window_bounds = array<i64: 8, 128>}, {pipeline_mode = #tpu.pipeline_mode<synchronous>, transform_indices = @transform_1, window_bounds = array<i64: 128, 128>}, {pipeline_mode = #tpu.pipeline_mode<synchronous>, transform_indices = @transform_2, window_bounds = array<i64: 1, 128>}, {pipeline_mode = #tpu.pipeline_mode<synchronous>, transform_indices = @transform_3, window_bounds = array<i64: 128, 128>}, {pipeline_mode = #tpu.pipeline_mode<synchronous>, transform_indices = @transform_4, window_bounds = array<i64: 1, 128>}, {pipeline_mode = #tpu.pipeline_mode<synchronous>, transform_indices = @transform_5, window_bounds = array<i64: 128, 128>}, {pipeline_mode = #tpu.pipeline_mode<synchronous>, transform_indices = @transform_6, window_bounds = array<i64: 1, 128>}, {pipeline_mode = #tpu.pipeline_mode<synchronous>, transform_indices = @transform_7, window_bounds = array<i64: 1, 128>}, {transform_indices = @transform_8, window_bounds = array<i64: 8, 128>}]} {
    %c0 = arith.constant 0 : index
    %c0_0 = arith.constant 0 : index
    %0 = vector.load %arg1[%c0, %c0_0] : memref<8x128xf32, #tpu.memory_space<vmem>>, vector<8x128xf32>
    %c0_1 = arith.constant 0 : index
    %c0_2 = arith.constant 0 : index
    %1 = vector.load %arg2[%c0_1, %c0_2] : memref<128x128xf32, #tpu.memory_space<vmem>>, vector<128x128xf32>
    %c0_3 = arith.constant 0 : index
    %c0_4 = arith.constant 0 : index
    %2 = vector.load %arg3[%c0_3, %c0_4] : memref<1x128xf32, #tpu.memory_space<vmem>>, vector<1x128xf32>
    %cst = arith.constant dense<0.000000e+00> : vector<8x128xf32>
    %3 = tpu.matmul %0, %1, %cst {dimension_numbers = #tpu.dot_dimension_numbers<[1], [0], [0], [1], [0, 0, 1, 1], [], []>} : vector<8x128xf32>, vector<128x128xf32>, vector<8x128xf32> -> vector<8x128xf32>
    %4 = vector.broadcast %2 : vector<1x128xf32> to vector<8x128xf32>
    %5 = arith.addf %3, %4 : vector<8x128xf32>
    %c0_5 = arith.constant 0 : index
    %c0_6 = arith.constant 0 : index
    %6 = vector.load %arg8[%c0_5, %c0_6] : memref<1x128xf32, #tpu.memory_space<vmem>>, vector<1x1xf32>
    %cst_7 = arith.constant 0.000000e+00 : f32
    %7 = vector.broadcast %cst_7 : f32 to vector<8x128xf32>
    %8 = arith.maximumf %5, %7 : vector<8x128xf32>
    %cst_8 = arith.constant 0.000000e+00 : f32
    %9 = vector.broadcast %cst_8 : f32 to vector<8x128xf32>
    %10 = arith.minimumf %5, %9 : vector<8x128xf32>
    %11 = vector.broadcast %6 : vector<1x1xf32> to vector<8x128xf32>
    %12 = arith.mulf %11, %10 : vector<8x128xf32>
    %13 = arith.addf %8, %12 : vector<8x128xf32>
    %c0_9 = arith.constant 0 : index
    %c0_10 = arith.constant 0 : index
    %14 = vector.load %arg4[%c0_9, %c0_10] : memref<128x128xf32, #tpu.memory_space<vmem>>, vector<128x128xf32>
    %c0_11 = arith.constant 0 : index
    %c0_12 = arith.constant 0 : index
    %15 = vector.load %arg5[%c0_11, %c0_12] : memref<1x128xf32, #tpu.memory_space<vmem>>, vector<1x128xf32>
    %cst_13 = arith.constant dense<0.000000e+00> : vector<8x128xf32>
    %16 = tpu.matmul %13, %14, %cst_13 {dimension_numbers = #tpu.dot_dimension_numbers<[1], [0], [0], [1], [0, 0, 1, 1], [], []>} : vector<8x128xf32>, vector<128x128xf32>, vector<8x128xf32> -> vector<8x128xf32>
    %17 = vector.broadcast %15 : vector<1x128xf32> to vector<8x128xf32>
    %18 = arith.addf %16, %17 : vector<8x128xf32>
    %c0_14 = arith.constant 0 : index
    %c1 = arith.constant 1 : index
    %19 = vector.load %arg8[%c0_14, %c1] : memref<1x128xf32, #tpu.memory_space<vmem>>, vector<1x1xf32>
    %cst_15 = arith.constant 0.000000e+00 : f32
    %20 = vector.broadcast %cst_15 : f32 to vector<8x128xf32>
    %21 = arith.maximumf %18, %20 : vector<8x128xf32>
    %cst_16 = arith.constant 0.000000e+00 : f32
    %22 = vector.broadcast %cst_16 : f32 to vector<8x128xf32>
    %23 = arith.minimumf %18, %22 : vector<8x128xf32>
    %24 = vector.broadcast %19 : vector<1x1xf32> to vector<8x128xf32>
    %25 = arith.mulf %24, %23 : vector<8x128xf32>
    %26 = arith.addf %21, %25 : vector<8x128xf32>
    %27 = arith.addf %26, %13 : vector<8x128xf32>
    %c0_17 = arith.constant 0 : index
    %c0_18 = arith.constant 0 : index
    %28 = vector.load %arg6[%c0_17, %c0_18] : memref<128x128xf32, #tpu.memory_space<vmem>>, vector<128x128xf32>
    %c0_19 = arith.constant 0 : index
    %c0_20 = arith.constant 0 : index
    %29 = vector.load %arg7[%c0_19, %c0_20] : memref<1x128xf32, #tpu.memory_space<vmem>>, vector<1x128xf32>
    %cst_21 = arith.constant dense<0.000000e+00> : vector<8x128xf32>
    %30 = tpu.matmul %27, %28, %cst_21 {dimension_numbers = #tpu.dot_dimension_numbers<[1], [0], [0], [1], [0, 0, 1, 1], [], []>} : vector<8x128xf32>, vector<128x128xf32>, vector<8x128xf32> -> vector<8x128xf32>
    %31 = vector.broadcast %29 : vector<1x128xf32> to vector<8x128xf32>
    %32 = arith.addf %30, %31 : vector<8x128xf32>
    %c0_22 = arith.constant 0 : index
    %c0_23 = arith.constant 0 : index
    %33 = vector.load %arg9[%c0_22, %c0_23] : memref<8x128xf32, #tpu.memory_space<vmem>>, vector<8x128xf32>
    tpu.vector_store %arg9[%c0_22, %c0_23], %32 {strides = array<i32>} : memref<8x128xf32, #tpu.memory_space<vmem>>, vector<8x128xf32>,
    return
  }
  func.func @transform_0(%arg0: i32) -> (i32, i32) {
    %c0_i32 = arith.constant 0 : i32
    %c0_i32_0 = arith.constant 0 : i32
    return %arg0, %c0_i32 : i32, i32
  }
  func.func @transform_1(%arg0: i32) -> (i32, i32) {
    %c0_i32 = arith.constant 0 : i32
    %c0_i32_0 = arith.constant 0 : i32
    %c0_i32_1 = arith.constant 0 : i32
    return %c0_i32, %c0_i32_0 : i32, i32
  }
  func.func @transform_2(%arg0: i32) -> (i32, i32) {
    %c0_i32 = arith.constant 0 : i32
    %c0_i32_0 = arith.constant 0 : i32
    %c0_i32_1 = arith.constant 0 : i32
    return %c0_i32, %c0_i32_0 : i32, i32
  }
  func.func @transform_3(%arg0: i32) -> (i32, i32) {
    %c0_i32 = arith.constant 0 : i32
    %c0_i32_0 = arith.constant 0 : i32
    %c0_i32_1 = arith.constant 0 : i32
    return %c0_i32, %c0_i32_0 : i32, i32
  }
  func.func @transform_4(%arg0: i32) -> (i32, i32) {
    %c0_i32 = arith.constant 0 : i32
    %c0_i32_0 = arith.constant 0 : i32
    %c0_i32_1 = arith.constant 0 : i32
    return %c0_i32, %c0_i32_0 : i32, i32
  }
  func.func @transform_5(%arg0: i32) -> (i32, i32) {
    %c0_i32 = arith.constant 0 : i32
    %c0_i32_0 = arith.constant 0 : i32
    %c0_i32_1 = arith.constant 0 : i32
    return %c0_i32, %c0_i32_0 : i32, i32
  }
  func.func @transform_6(%arg0: i32) -> (i32, i32) {
    %c0_i32 = arith.constant 0 : i32
    %c0_i32_0 = arith.constant 0 : i32
    %c0_i32_1 = arith.constant 0 : i32
    return %c0_i32, %c0_i32_0 : i32, i32
  }
  func.func @transform_7(%arg0: i32) -> (i32, i32) {
    %c0_i32 = arith.constant 0 : i32
    %c0_i32_0 = arith.constant 0 : i32
    %c0_i32_1 = arith.constant 0 : i32
    return %c0_i32, %c0_i32_0 : i32, i32
  }
  func.func @transform_8(%arg0: i32) -> (i32, i32) {
    %c0_i32 = arith.constant 0 : i32
    %c0_i32_0 = arith.constant 0 : i32
    return %arg0, %c0_i32 : i32, i32
  }
}

</mosaic_0001>

<bundles_post_ra>
// kernel: tpu_custom_call.1
= control target key start
LH: loop header
LB: loop body
LE: loop exit
PB: predicated region body
PF: predicated region fallthrough
CT: control target
= control target key end

     0   :  { %13 = vsyncpa [#allocation3], 0  ;;  %s940_s0 = inlined_call_operand.hbm [shape: f32[8,128], index: 0, kind: input, shape index: {}]   ;;  %s941_s1 = inlined_call_operand.hbm [shape: f32[128,128], index: 1, kind: input, shape index: {}]   ;;  %s942_s2 = inlined_call_operand.vmem [shape: f32[1,128], index: 2, kind: input, shape index: {}]   ;;  %s943_s3 = inlined_call_operand.hbm [shape: f32[128,128], index: 3, kind: input, shape index: {}]   ;;  %s944_s4 = inlined_call_operand.vmem [shape: f32[1,128], index: 4, kind: input, shape index: {}]   ;;  %s945_s5 = inlined_call_operand.hbm [shape: f32[128,128], index: 5, kind: input, shape index: {}]   ;;  %s946_s6 = inlined_call_operand.vmem [shape: f32[1,128], index: 6, kind: input, shape index: {}]   ;;  %s947_s7 = inlined_call_operand.vmem [shape: f32[1,128], index: 7, kind: input, shape index: {}]   ;;  %s948_s8 = inlined_call_operand.hbm [shape: f32[8,128], index: 8, kind: output, shape index: {}]  }
   0x1   :  { %14 = vsyncpa [#allocation6], 0 }
   0x2   :  { %15 = vsyncpa [#allocation9], 0 }
   0x3   :  { %16 = vsyncpa [#allocation4], 0  ;;  %s768_s27 = smov [#allocation5]   ;;  %s650_s9 = scalar_lea.hbm %s941_s1, 2048 }
   0x4   :  { %s32_s28 = sshll.u32 %s768_s27, 4  ;;  %p651_p0 = scmp.ne.s32.totalorder %s941_s1, %s650_s9  ;;  %s33_s28 = int_to_ptr.vmem [resolvable:$true] %s32_s28 }
   0x5   :  { %p654_p1 = scmp.lt.u32.totalorder %s650_s9, %s941_s1 }
   0x7   :  { %p656_p2 = pnand %p654_p1, %p651_p0 }
   0x9   :  { %659 = shalt.err (!%p656_p2)
}
   0xa   :  { %s660_s14 = scalar_lea.vmem %s33_s28, 2048  ;;  %p665_p4 = scmp.lt.s32.totalorder %s33_s28, %s33_s28 }
   0xb   :  { %p661_p3 = scmp.ne.s32.totalorder %s33_s28, %s660_s14  ;;  %p666_p5 = scmp.lt.s32.totalorder %s660_s14, %s660_s14 }
   0xd   :  { %p667_p6 = por %p666_p5, %p665_p4 }
   0xf   :  { %p668_p7 = pnand %p667_p6, %p661_p3 }
  0x11   :  { %671 = shalt.err (!%p668_p7)
}
  0x12   :  { %s769_s15 = smov 128   ;;  %s770_s16 = smov 8  }
  0x13   :  { %38 = dma.hbm_to_vmem [thread:$0]  %s941_s1, 2048, %s33_s28, [#allocation6], %s769_s15, %s769_s15, %s770_s16  }
  0x14   :  { %s771_s19 = smov [#allocation2]   ;;  %s772_s21 = smov [#allocation7]  }
  0x15   :  { %s23_s20 = sshll.u32 %s771_s19, 4  ;;  %s46_s22 = sshll.u32 %s772_s21, 4  ;;  %s24_s20 = int_to_ptr.vmem [resolvable:$true] %s23_s20  ;;  %s47_s22 = int_to_ptr.vmem [resolvable:$true] %s46_s22 }
  0x16   :  { %s672_s25 = scalar_lea.hbm %s940_s0, 128 }
  0x17   :  { %p673_p8 = scmp.ne.s32.totalorder %s940_s0, %s672_s25  ;;  %p676_p9 = scmp.lt.u32.totalorder %s672_s25, %s940_s0 }
  0x19   :  { %p678_p10 = pnand %p676_p9, %p673_p8 }
  0x1b   :  { %681 = shalt.err (!%p678_p10)
}
  0x1c   :  { %s682_s1 = scalar_lea.vmem %s24_s20, 128  ;;  %p687_p12 = scmp.lt.s32.totalorder %s24_s20, %s24_s20 }
  0x1d   :  { %p683_p11 = scmp.ne.s32.totalorder %s24_s20, %s682_s1  ;;  %p688_p13 = scmp.lt.s32.totalorder %s682_s1, %s682_s1 }
  0x1f   :  { %p689_p0 = por %p688_p13, %p687_p12 }
  0x21   :  { %p690_p1 = pnand %p689_p0, %p683_p11 }
  0x23   :  { %693 = shalt.err (!%p690_p1)
}
  0x24   :  { %26 = dma.hbm_to_vmem [thread:$0]  %s940_s0, 128, %s24_s20, [#allocation3]  }
  0x25   :  { %s694_s12 = scalar_lea.hbm %s943_s3, 2048 }
  0x26   :  { %p695_p2 = scmp.ne.s32.totalorder %s943_s3, %s694_s12  ;;  %p698_p3 = scmp.lt.u32.totalorder %s694_s12, %s943_s3 }
  0x28   :  { %p700_p4 = pnand %p698_p3, %p695_p2 }
  0x2a   :  { %703 = shalt.err (!%p700_p4)
}
  0x2b   :  { %s704_s19 = scalar_lea.vmem %s47_s22, 2048  ;;  %p709_p6 = scmp.lt.s32.totalorder %s47_s22, %s47_s22 }
  0x2c   :  { %p705_p5 = scmp.ne.s32.totalorder %s47_s22, %s704_s19  ;;  %p710_p7 = scmp.lt.s32.totalorder %s704_s19, %s704_s19 }
  0x2e   :  { %p711_p8 = por %p710_p7, %p709_p6 }
  0x30   :  { %p712_p9 = pnand %p711_p8, %p705_p5 }
  0x32   :  { %715 = shalt.err (!%p712_p9)
}
  0x33   :  { %52 = dma.hbm_to_vmem [thread:$0]  %s943_s3, 2048, %s47_s22, [#allocation6], %s769_s15, %s769_s15, %s770_s16  }
  0x34   :  { %s773_s21 = smov [#allocation8]   ;;  %s716_s26 = scalar_lea.hbm %s945_s5, 2048 }
  0x35   :  { %s60_s23 = sshll.u32 %s773_s21, 4  ;;  %p717_p10 = scmp.ne.s32.totalorder %s945_s5, %s716_s26  ;;  %s61_s23 = int_to_ptr.vmem [resolvable:$true] %s60_s23 }
  0x36   :  { %p720_p11 = scmp.lt.u32.totalorder %s716_s26, %s945_s5 }
  0x38   :  { %p722_p12 = pnand %p720_p11, %p717_p10 }
  0x3a   :  { %725 = shalt.err (!%p722_p12)
}
  0x3b   :  { %s726_s28 = scalar_lea.vmem %s61_s23, 2048  ;;  %p731_p0 = scmp.lt.s32.totalorder %s61_s23, %s61_s23 }
  0x3c   :  { %p727_p13 = scmp.ne.s32.totalorder %s61_s23, %s726_s28  ;;  %p732_p1 = scmp.lt.s32.totalorder %s726_s28, %s726_s28 }
  0x3e   :  { %p733_p2 = por %p732_p1, %p731_p0 }
  0x40   :  { %p734_p3 = pnand %p733_p2, %p727_p13 }
  0x42   :  { %737 = shalt.err (!%p734_p3)
}
  0x43   :  { %66 = dma.hbm_to_vmem [thread:$0]  %s945_s5, 2048, %s61_s23, [#allocation9], %s769_s15, %s769_s15, %s770_s16  }
  0x44   :  { %760 = dma.done.wait [#allocation3], 128  }
  0x45   :  { %761 = vsyncadd [#allocation3], 4294967168 }
  0x46   :  { %762 = dma.done.wait [#allocation6], 4096  }
  0x47   :  { %763 = vsyncadd [#allocation6], 4294963200 }
  0x48   :  { %764 = dma.done.wait [#allocation9], 2048  }
  0x49   :  { %765 = vsyncadd [#allocation9], 4294965248  ;;  %v774_v0 = vmov 0.0|0.0   ;;  %vm775_vm0 = vmmov 0   ;;  %v776_v1 = vmov 0.0   ;;  %v777_v2 = vmov 0  }
  0x4a   :  { %564 = vmatprep.subr.bf16.mxu0 %v774_v0  ;;  %491 = vmatprep.mubr.msk.f32.mxu0 %vm775_vm0, %v776_v1  ;;  %v84_v3 = vld [vmem:[#allocation5] sm:$0xff]  ;;  %v85_v4 = vld [vmem:[#allocation5 + $0x8] sm:$0xff]  ;;  %v86_v5 = vld [vmem:[#allocation5 + $0x10] sm:$0xff]  ;;  %v778_v56 = vmov 1   ;;  %s779_s12 = smov [#allocation10]  }
  0x4b   :  { %648 = vset.pattern.permute.xlu0 %v777_v2  ;;  %588 = vmatprep.subr.bf16.mxu1 %v774_v0  ;;  %v565_v6 = vpack.c.bf16 %v85_v4, %v84_v3  ;;  %v87_v7 = vld [vmem:[#allocation5 + $0x18] sm:$0xff]  ;;  %v88_v9 = vld [vmem:[#allocation5 + $0x20] sm:$0xff]  ;;  %v89_v10 = vld [vmem:[#allocation5 + $0x28] sm:$0xff]  ;;  %s393_s13 = sshll.u32 %s779_s12, 4  ;;  %s394_s13 = int_to_ptr.vmem [resolvable:$true] %s393_s13 }
  0x4c   :  { %526 = vmatprep.mubr.msk.f32.mxu1 %vm775_vm0, %v776_v1  ;;  %v568_v8 = vpack.c.bf16 %v87_v7, %v86_v5  ;;  %v892_v11 = vld [vmem:[%s947_s7] ss:$0 sm:$0xff]  ;;  %v191_v12 = vld [vmem:[#allocation7] sm:$0xff]  ;;  %v192_v13 = vld [vmem:[#allocation7 + $0x8] sm:$0xff]  ;;  %v571_v15 = vpack.c.bf16 %v89_v10, %v88_v9  ;;  %p743_p5 = scmp.lt.s32.totalorder %s394_s13, %s394_s13 }
  0x4d   :  { %566 = vmatpush3.bf16.msra.mxu0 %v565_v6  ;;  %186 = vperm.xlu0 %648, %v892_v11   ;;  %v193_v14 = vld [vmem:[#allocation7 + $0x10] sm:$0xff]  ;;  %v589_v16 = vpack.c.bf16 %v192_v13, %v191_v12  ;;  %v194_v17 = vld [vmem:[#allocation7 + $0x18] sm:$0xff]  ;;  %v195_v21 = vld [vmem:[#allocation7 + $0x20] sm:$0xff] }
  0x4e   :  { %567 = vmatprep.subr.bf16.mxu0 %v774_v0  ;;  %v90_v18 = vld [vmem:[#allocation5 + $0x30] sm:$0xff]  ;;  %v91_v19 = vld [vmem:[#allocation5 + $0x38] sm:$0xff]  ;;  %v592_v20 = vpack.c.bf16 %v194_v17, %v193_v14  ;;  %v196_v22 = vld [vmem:[#allocation7 + $0x28] sm:$0xff] }
  0x4f   :  { %590 = vmatpush3.bf16.msra.mxu1 %v589_v16  ;;  %v574_v23 = vpack.c.bf16 %v91_v19, %v90_v18  ;;  %v92_v24 = vld [vmem:[#allocation5 + $0x40] sm:$0xff]  ;;  %v93_v25 = vld [vmem:[#allocation5 + $0x48] sm:$0xff]  ;;  %v595_v26 = vpack.c.bf16 %v196_v22, %v195_v21  ;;  %v197_v27 = vld [vmem:[#allocation7 + $0x30] sm:$0xff] }
  0x50   :  { %591 = vmatprep.subr.bf16.mxu1 %v774_v0  ;;  %v198_v28 = vld [vmem:[#allocation7 + $0x38] sm:$0xff]  ;;  %v577_v29 = vpack.c.bf16 %v93_v25, %v92_v24  ;;  %v94_v30 = vld [vmem:[#allocation5 + $0x50] sm:$0xff]  ;;  %v199_v33 = vld [vmem:[#allocation7 + $0x40] sm:$0xff] }
  0x51   :  { %569 = vmatpush3.bf16.msra.mxu0 %v568_v8  ;;  %v95_v31 = vld [vmem:[#allocation5 + $0x58] sm:$0xff]  ;;  %v598_v32 = vpack.c.bf16 %v198_v28, %v197_v27  ;;  %v200_v34 = vld [vmem:[#allocation7 + $0x48] sm:$0xff]  ;;  %v96_v36 = vld [vmem:[#allocation5 + $0x60] sm:$0xff]  ;;  %649 = vset.pattern.permute.xlu0 %v778_v56 }
  0x52   :  { %570 = vmatprep.subr.bf16.mxu0 %v774_v0  ;;  %v580_v35 = vpack.c.bf16 %v95_v31, %v94_v30  ;;  %v97_v37 = vld [vmem:[#allocation5 + $0x68] sm:$0xff]  ;;  %v601_v38 = vpack.c.bf16 %v200_v34, %v199_v33  ;;  %v201_v39 = vld [vmem:[#allocation7 + $0x50] sm:$0xff]  ;;  %v202_v40 = vld [vmem:[#allocation7 + $0x58] sm:$0xff]  ;;  %287 = vperm.xlu0 %649, %v892_v11  }
  0x53   :  { %593 = vmatpush3.bf16.msra.mxu1 %v592_v20  ;;  %v583_v41 = vpack.c.bf16 %v97_v37, %v96_v36  ;;  %v98_v42 = vld [vmem:[#allocation5 + $0x70] sm:$0xff]  ;;  %v99_v43 = vld [vmem:[#allocation5 + $0x78] sm:$0xff]  ;;  %v604_v44 = vpack.c.bf16 %v202_v40, %v201_v39  ;;  %v203_v47 = vld [vmem:[#allocation7 + $0x60] sm:$0xff] }
  0x54   :  { %594 = vmatprep.subr.bf16.mxu1 %v774_v0  ;;  %v586_v45 = vpack.c.bf16 %v99_v43, %v98_v42  ;;  %v83_v46 = vld [vmem:[#allocation2] sm:$0xff]  ;;  %v204_v48 = vld [vmem:[#allocation7 + $0x68] sm:$0xff]  ;;  %v205_v50 = vld [vmem:[#allocation7 + $0x70] sm:$0xff] }
  0x55   :  { %572 = vmatpush3.bf16.msra.mxu0 %v571_v15  ;;  %v607_v49 = vpack.c.bf16 %v204_v48, %v203_v47  ;;  %v206_v51 = vld [vmem:[#allocation7 + $0x78] sm:$0xff]  ;;  %v293_v53 = vld [vmem:[#allocation8] sm:$0xff]  ;;  %v294_v54 = vld [vmem:[#allocation8 + $0x8] sm:$0xff] }
  0x56   :  { %573 = vmatprep.subr.bf16.mxu0 %v774_v0  ;;  %v610_v52 = vpack.c.bf16 %v206_v51, %v205_v50  ;;  %v295_v55 = vld [vmem:[#allocation8 + $0x10] sm:$0xff]  ;;  %v613_v57 = vpack.c.bf16 %v294_v54, %v293_v53  ;;  %v296_v58 = vld [vmem:[#allocation8 + $0x18] sm:$0xff]  ;;  %v297_v60 = vld [vmem:[#allocation8 + $0x20] sm:$0xff] }
  0x57   :  { %596 = vmatpush3.bf16.msra.mxu1 %v595_v26  ;;  %v616_v59 = vpack.c.bf16 %v296_v58, %v295_v55  ;;  %v298_v61 = vld [vmem:[#allocation8 + $0x28] sm:$0xff]  ;;  %v299_v63 = vld [vmem:[#allocation8 + $0x30] sm:$0xff]  ;;  %v301_v3 = vld [vmem:[#allocation8 + $0x40] sm:$0xff] }
  0x58   :  { %597 = vmatprep.subr.bf16.mxu1 %v774_v0  ;;  %v619_v62 = vpack.c.bf16 %v298_v61, %v297_v60  ;;  %v302_v4 = vld [vmem:[#allocation8 + $0x48] sm:$0xff]  ;;  %v404_v6 = vld [vmem:[%s942_s2] ss:$0 sm:$0xff]  ;;  %v303_v15 = vld [vmem:[#allocation8 + $0x50] sm:$0xff] }
  0x59   :  { %575 = vmatpush3.bf16.msra.mxu0 %v574_v23  ;;  %v625_v5 = vpack.c.bf16 %v302_v4, %v301_v3  ;;  %v304_v16 = vld [vmem:[#allocation8 + $0x58] sm:$0xff]  ;;  %v305_v18 = vld [vmem:[#allocation8 + $0x60] sm:$0xff]  ;;  %v306_v19 = vld [vmem:[#allocation8 + $0x68] sm:$0xff] }
  0x5a   :  { %576 = vmatprep.subr.bf16.mxu0 %v774_v0  ;;  %v628_v17 = vpack.c.bf16 %v304_v16, %v303_v15  ;;  %v631_v20 = vpack.c.bf16 %v306_v19, %v305_v18  ;;  %v307_v21 = vld [vmem:[#allocation8 + $0x70] sm:$0xff]  ;;  %v308_v22 = vld [vmem:[#allocation8 + $0x78] sm:$0xff] }
  0x5b   :  { %599 = vmatpush3.bf16.msra.mxu1 %v598_v32  ;;  %v634_v23 = vpack.c.bf16 %v308_v22, %v307_v21  ;;  %v406_v24 = vld [vmem:[%s944_s4] ss:$0 sm:$0xff]  ;;  %s738_s4 = scalar_lea.vmem %s394_s13, 128 }
  0x5c   :  { %600 = vmatprep.subr.bf16.mxu1 %v774_v0  ;;  %p739_p4 = scmp.ne.s32.totalorder %s394_s13, %s738_s4  ;;  %p744_p6 = scmp.lt.s32.totalorder %s738_s4, %s738_s4 }
  0x5d   :  { %578 = vmatpush3.bf16.msra.mxu0 %v577_v29 }
  0x5e   :  { %579 = vmatprep.subr.bf16.mxu0 %v774_v0  ;;  %p745_p7 = por %p744_p6, %p743_p5 }
  0x5f   :  { %602 = vmatpush3.bf16.msra.mxu1 %v601_v38 }
  0x60   :  { %603 = vmatprep.subr.bf16.mxu1 %v774_v0  ;;  %p746_p8 = pnand %p745_p7, %p739_p4 }
  0x61   :  { %581 = vmatpush3.bf16.msra.mxu0 %v580_v35 }
  0x62   :  { %582 = vmatprep.subr.bf16.mxu0 %v774_v0 }
  0x63   :  { %605 = vmatpush3.bf16.msra.mxu1 %v604_v44 }
  0x64   :  { %606 = vmatprep.subr.bf16.mxu1 %v774_v0 }
  0x65   :  { %584 = vmatpush3.bf16.msra.mxu0 %v583_v41 }
  0x66   :  { %585 = vmatprep.subr.bf16.mxu0 %v774_v0 }
  0x67   :  { %608 = vmatpush3.bf16.msra.mxu1 %v607_v49 }
  0x68   :  { %609 = vmatprep.subr.bf16.mxu1 %v774_v0 }
  0x69   :  { %587 = vmatpush3.bf16.msra.mxu0 %v586_v45 }
  0x6a   :  { %612 = vmatprep.subr.bf16.mxu0 %v774_v0 }
  0x6b   :  { %611 = vmatpush3.bf16.msra.mxu1 %v610_v52 }
  0x6c   :  { %492 = vmatmul.mubr.f32.vlgmr.msra.gmra.mrb[0].mxu0 %v83_v46 }
  0x6d   :  { %561 = vmatprep.mubr.msk.f32.mxu0 %vm775_vm0, %v776_v1  ;;  %614 = vmatpush3.bf16.msra.mxu0 %v613_v57  ;;  %v300_v1 = vld [vmem:[#allocation8 + $0x38] sm:$0xff] }
  0x6e   :  { %615 = vmatprep.subr.bf16.mxu0 %v774_v0  ;;  %v622_v2 = vpack.c.bf16 %v300_v1, %v299_v63 }
  0x71   :  { %617 = vmatpush3.bf16.msra.mxu0 %v616_v59 }
  0x72   :  { %618 = vmatprep.subr.bf16.mxu0 %v774_v0 }
  0x75   :  { %620 = vmatpush3.bf16.msra.mxu0 %v619_v62 }
  0x76   :  { %621 = vmatprep.subr.bf16.mxu0 %v774_v0 }
  0x79   :  { %623 = vmatpush3.bf16.msra.mxu0 %v622_v2 }
  0x7a   :  { %624 = vmatprep.subr.bf16.mxu0 %v774_v0 }
  0x7d   :  { %626 = vmatpush3.bf16.msra.mxu0 %v625_v5 }
  0x7e   :  { %627 = vmatprep.subr.bf16.mxu0 %v774_v0 }
  0x81   :  { %629 = vmatpush3.bf16.msra.mxu0 %v628_v17 }
  0x82   :  { %630 = vmatprep.subr.bf16.mxu0 %v774_v0 }
  0x85   :  { %632 = vmatpush3.bf16.msra.mxu0 %v631_v20 }
  0x86   :  { %633 = vmatprep.subr.bf16.mxu0 %v774_v0  ;;  %v407_v0 = vld [vmem:[%s946_s6] ss:$0 sm:$0xff] }
  0x89   :  { %635 = vmatpush3.bf16.msra.mxu0 %v634_v23 }
  0xcc   :  { %v187_v10 = vpop.permute.xlu0 %186 }
  0xd1   :  { %v288_v28 = vpop.permute.xlu0 %287 }
 0x13f   :  { %v173_v7 = vpop.f32.mrb[0].mxu0 }
 0x140   :  { %v174_v8 = vadd.f32 %v404_v6, %v173_v7  ;;  %v493_v9 = vpop.f32.mrb[1].mxu0 }
 0x142   :  { %v179_v11 = vmin.f32 %v174_v8, 0.0  ;;  %v178_v12 = vmax.f32 %v174_v8, 0.0 }
 0x144   :  { %v189_v13 = vmul.f32 %v187_v10, %v179_v11 }
 0x146   :  { %v190_v14 = vadd.f32 %v189_v13, %v178_v12 }
 0x148   :  { %527 = vmatmul.mubr.f32.vlgmr.msra.gmra.mrb[0].mxu1 %v190_v14 }
 0x21b   :  { %v280_v25 = vpop.f32.mrb[0].mxu1 }
 0x21c   :  { %v281_v26 = vadd.f32 %v406_v24, %v280_v25  ;;  %v528_v27 = vpop.f32.mrb[1].mxu1 }
 0x21e   :  { %v285_v29 = vmin.f32 %v281_v26, 0.0  ;;  %v284_v30 = vmax.f32 %v281_v26, 0.0 }
 0x220   :  { %v290_v31 = vmul.f32 %v288_v28, %v285_v29 }
 0x222   :  { %v291_v32 = vadd.f32 %v290_v31, %v284_v30 }
 0x224   :  { %v292_v33 = vadd.f32 %v291_v32, %v190_v14 }
 0x226   :  { %562 = vmatmul.mubr.f32.vlgmr.msra.gmra.mrb[2].mxu0 %v292_v33 }
 0x2f9   :  { %v382_v34 = vpop.f32.mrb[2].mxu0 }
 0x2fa   :  { %v383_v35 = vadd.f32 %v407_v0, %v382_v34  ;;  %v563_v36 = vpop.f32.mrb[3].mxu0 }
 0x2fc   :  { %386 = vst [vmem:[#allocation10] sm:$0xff] %v383_v35 }
 0x2fd   :  { %749 = shalt.err (!%p746_p8)
}
 0x2fe   :  { %s750_s18 = scalar_lea.hbm %s948_s8, 128 }
 0x2ff   :  { %p751_p9 = scmp.ne.s32.totalorder %s948_s8, %s750_s18  ;;  %p754_p10 = scmp.lt.u32.totalorder %s750_s18, %s948_s8 }
 0x301   :  { %p756_p11 = pnand %p754_p10, %p751_p9 }
 0x303   :  { %759 = shalt.err (!%p756_p11)
}
 0x304   :  { %396 = dma.vmem_to_hbm [thread:$0]  %s394_s13, 128, %s948_s8, [#allocation4]  }
 0x305   :  { %766 = dma.done.wait [#allocation4], 128  }
 0x306   :  { %767 = vsyncadd [#allocation4], 4294967168 }
 0x307   :  { %400 = vsyncpa [#allocation3], 1 }
 0x308   :  { %401 = vsyncpa [#allocation6], 1 }
 0x309   :  { %402 = vsyncpa [#allocation9], 1 }
 0x30a   :  { %403 = vsyncpa [#allocation4], 1 }

</bundles_post_ra>
